<compile_context>
chip_gen: v5e
topology: v5e:2x2
jax: 0.10.0
libtpu: 0.0.40
codegen_flags: <defaults>
</compile_context>

<pallas_src>
import functools

import jax
import jax.numpy as jnp
from jax.experimental import pallas as pl
from jax.experimental.pallas import tpu as pltpu


_LANE = 128
_CHUNK = 512  # lane columns per inner iteration; intermediates stay in vregs


def _round_up(n, m):
    return ((n + m - 1) // m) * m


def _mlp_kernel(xT_ref, w1_ref, b1_ref, w2_ref, b2_ref, w3_ref, b3_ref, oT_ref,
                *, chunk, n_chunks):
    # Resident whole-array blocks (tiny); load once per grid step.
    w1 = w1_ref[...]          # (64, 6)   bf16 or f32
    w2 = w2_ref[...]          # (32, 64)
    w3 = w3_ref[...]          # (2, 32)
    b1 = b1_ref[...]          # (64, 1)   f32, broadcast over lanes
    b2 = b2_ref[...]          # (32, 1)
    b3 = b3_ref[...]          # (2, 1)

    def body(c, carry):
        j = pl.multiple_of(c * chunk, chunk)
        xT = xT_ref[:, pl.ds(j, chunk)]                          # (6, chunk) f32

        # Layer 1: Linear(6 -> 64) + ReLU (Dropout = identity in eval mode).
        h1 = jnp.dot(w1, xT.astype(w1.dtype),
                     preferred_element_type=jnp.float32)         # (64, chunk)
        h1 = jnp.maximum(h1 + b1, 0.0)

        # Layer 2: Linear(64 -> 32) + ReLU.
        h2 = jnp.dot(w2, h1.astype(w2.dtype),
                     preferred_element_type=jnp.float32)         # (32, chunk)
        h2 = jnp.maximum(h2 + b2, 0.0)

        # Layer 3: Linear(32 -> 2).
        out = jnp.dot(w3, h2.astype(w3.dtype),
                      preferred_element_type=jnp.float32) + b3   # (2, chunk)

        oT_ref[:, pl.ds(j, chunk)] = out.astype(oT_ref.dtype)
        return carry

    jax.lax.fori_loop(0, n_chunks, body, 0, unroll=True)


def _choose_tiling(B, block_batch):
    """Pick (tile, padded_batch, n_tiles, chunk) for the lane (batch) axis."""
    Br = _round_up(max(B, 1), _LANE)
    if Br <= _CHUNK:
        return Br, Br, 1, Br                      # one tile, one full-width chunk
    n = pl.cdiv(Br, _round_up(block_batch, _CHUNK))
    if n > 1 and n % 2:
        n += 1                                    # even tile count: v7x 2-TC balance
    TB = _round_up(pl.cdiv(Br, n), _CHUNK)
    return TB, n * TB, n, _CHUNK


def ev_consumption_forward(x, params, *, block_batch=8192, precision="bf16"):
    """Fused MLP forward.

    x: (B, 6) float32  -> returns (B, 2) float32.
    params (PyTorch layout): w1 (64,6), b1 (64,), w2 (32,64), b2 (32,),
                             w3 (2,32), b3 (2,).
    precision: "bf16" (single-pass MXU, f32 accumulate, ~1e-2 relative) or
               "f32"  (multi-pass MXU, ~1e-6 relative).
    """
    B, in_dim = x.shape
    w_dtype = jnp.bfloat16 if precision == "bf16" else jnp.float32
    w1 = params["w1"].astype(w_dtype)
    w2 = params["w2"].astype(w_dtype)
    w3 = params["w3"].astype(w_dtype)
    b1c = params["b1"].reshape(-1, 1).astype(jnp.float32)
    b2c = params["b2"].reshape(-1, 1).astype(jnp.float32)
    b3c = params["b3"].reshape(-1, 1).astype(jnp.float32)
    out_dim = w3.shape[0]

    TB, Bp, n_tiles, chunk = _choose_tiling(B, block_batch)
    n_chunks = TB // chunk

    # Transposed, zero-padded input: batch on the lane axis.
    # TODO(synk): this transpose+pad is an extra HBM pass; keep activations in
    #             (feature, batch) layout upstream to avoid it in serving.
    xT = jnp.pad(jnp.transpose(x.astype(jnp.float32)), ((0, 0), (0, Bp - B)))

    def resident(a):
        # Same block index every grid step -> stays VMEM-resident, no re-DMA.
        return pl.BlockSpec(a.shape, lambda i: (0, 0))

    weight_bytes = sum(int(a.size) * a.dtype.itemsize
                       for a in (w1, b1c, w2, b2c, w3, b3c))
    cost = pl.CostEstimate(
        flops=2 * Bp * (in_dim * 64 + 64 * 32 + 32 * out_dim),
        transcendentals=0,
        bytes_accessed=int(xT.size) * 4 + out_dim * Bp * 4 + weight_bytes,
    )

    kernel = functools.partial(_mlp_kernel, chunk=chunk, n_chunks=n_chunks)

    outT = pl.pallas_call(
        kernel,
        out_shape=jax.ShapeDtypeStruct((out_dim, Bp), jnp.float32),
        grid=(n_tiles,),
        in_specs=[
            pl.BlockSpec((in_dim, TB), lambda i: (0, i)),   # x^T batch tiles
            resident(w1), resident(b1c),
            resident(w2), resident(b2c),
            resident(w3), resident(b3c),
        ],
        out_specs=pl.BlockSpec((out_dim, TB), lambda i: (0, i)),
        compiler_params=pltpu.CompilerParams(
            dimension_semantics=("parallel",),       # megacore sharding on v7x
            vmem_limit_bytes=32 * 1024 * 1024,       # hard scoped ceiling on v7x
        ),
        cost_estimate=cost,
    )(xT, w1, b1c, w2, b2c, w3, b3c)

    return jnp.transpose(outT[:, :B])


def init_params(key, input_size=6, hidden1=64, hidden2=32, output_size=2):
    """Deterministic nn.Linear-style init; weights in (out, in) layout."""
    ks = jax.random.split(key, 6)

    def linear_init(kw, kb, fan_in, fan_out):
        bound = 1.0 / jnp.sqrt(fan_in)
        w = jax.random.uniform(kw, (fan_out, fan_in), jnp.float32, -bound, bound)
        b = jax.random.uniform(kb, (fan_out,), jnp.float32, -bound, bound)
        return w, b

    w1, b1 = linear_init(ks[0], ks[1], input_size, hidden1)
    w2, b2 = linear_init(ks[2], ks[3], hidden1, hidden2)
    w3, b3 = linear_init(ks[4], ks[5], hidden2, output_size)
    return {"w1": w1, "b1": b1, "w2": w2, "b2": b2, "w3": w3, "b3": b3}


def reference_forward(x, p):
    h1 = jnp.maximum(x @ p["w1"].T + p["b1"], 0.0)
    h2 = jnp.maximum(h1 @ p["w2"].T + p["b2"], 0.0)
    return h2 @ p["w3"].T + p["b3"]


if __name__ == "__main__":
    key = jax.random.PRNGKey(0)
    k_param, k_x = jax.random.split(key)

    batch = 8
    # [distance, traffic, elevation, speed, SoC, temp]
    x = jax.random.normal(k_x, (batch, 6), dtype=jnp.float32)
    params = init_params(k_param)
    ref = reference_forward(x, params)

    # f32 MXU path: tight numerics.
    out_f32 = jax.block_until_ready(
        ev_consumption_forward(x, params, precision="f32"))
    assert out_f32.shape == (batch, 2), out_f32.shape
    assert jnp.allclose(out_f32, ref, atol=1e-5, rtol=1e-5), (
        f"f32 max abs err {jnp.max(jnp.abs(out_f32 - ref))}")

    # bf16 MXU path (default): single-pass matmuls, looser numerics.
    out_bf16 = jax.block_until_ready(ev_consumption_forward(x, params))
    assert out_bf16.shape == (batch, 2), out_bf16.shape
    assert jnp.allclose(out_bf16, ref, atol=5e-2, rtol=5e-2), (
        f"bf16 max abs err {jnp.max(jnp.abs(out_bf16 - ref))}")

    # Larger batch: exercises the multi-chunk inner loop (default tiling) and
    # a 2-tile grid (block_batch=512).
    xb = jax.random.normal(jax.random.PRNGKey(1), (1000, 6), dtype=jnp.float32)
    ref_b = reference_forward(xb, params)
    out_b1 = jax.block_until_ready(ev_consumption_forward(xb, params))
    out_b2 = jax.block_until_ready(
        ev_consumption_forward(xb, params, block_batch=512))
    assert out_b1.shape == (1000, 2) and out_b2.shape == (1000, 2)
    assert jnp.allclose(out_b1, ref_b, atol=5e-2, rtol=5e-2)
    assert jnp.allclose(out_b2, ref_b, atol=5e-2, rtol=5e-2)

    print("KERNEL_OK")
</pallas_src>

<mosaic_0001>
module attributes {stable_mosaic.version = 11 : i64} {
  func.func @_mlp_kernel(%arg0: i32, %arg1: memref<6x128xf32, #tpu.memory_space<vmem>>, %arg2: memref<64x6xf32, #tpu.memory_space<vmem>>, %arg3: memref<64x1xf32, #tpu.memory_space<vmem>>, %arg4: memref<32x64xf32, #tpu.memory_space<vmem>>, %arg5: memref<32x1xf32, #tpu.memory_space<vmem>>, %arg6: memref<2x32xf32, #tpu.memory_space<vmem>>, %arg7: memref<2x1xf32, #tpu.memory_space<vmem>>, %arg8: memref<2x128xf32, #tpu.memory_space<vmem>>) attributes {dimension_semantics = [#tpu.dimension_semantics<parallel>], iteration_bounds = array<i64: 1>, scalar_prefetch = 0 : i64, scratch_operands = 0 : i64, tpu.core_type = #tpu.core_type<tc>, window_params = [{transform_indices = @transform_0, window_bounds = array<i64: 6, 128>}, {pipeline_mode = #tpu.pipeline_mode<synchronous>, transform_indices = @transform_1, window_bounds = array<i64: 64, 6>}, {pipeline_mode = #tpu.pipeline_mode<synchronous>, transform_indices = @transform_2, window_bounds = array<i64: 64, 1>}, {pipeline_mode = #tpu.pipeline_mode<synchronous>, transform_indices = @transform_3, window_bounds = array<i64: 32, 64>}, {pipeline_mode = #tpu.pipeline_mode<synchronous>, transform_indices = @transform_4, window_bounds = array<i64: 32, 1>}, {pipeline_mode = #tpu.pipeline_mode<synchronous>, transform_indices = @transform_5, window_bounds = array<i64: 2, 32>}, {pipeline_mode = #tpu.pipeline_mode<synchronous>, transform_indices = @transform_6, window_bounds = array<i64: 2, 1>}, {transform_indices = @transform_7, window_bounds = array<i64: 2, 128>}]} {
    %c0 = arith.constant 0 : index
    %c0_0 = arith.constant 0 : index
    %0 = vector.load %arg2[%c0, %c0_0] : memref<64x6xf32, #tpu.memory_space<vmem>>, vector<64x6xf32>
    %c0_1 = arith.constant 0 : index
    %c0_2 = arith.constant 0 : index
    %1 = vector.load %arg4[%c0_1, %c0_2] : memref<32x64xf32, #tpu.memory_space<vmem>>, vector<32x64xf32>
    %c0_3 = arith.constant 0 : index
    %c0_4 = arith.constant 0 : index
    %2 = vector.load %arg6[%c0_3, %c0_4] : memref<2x32xf32, #tpu.memory_space<vmem>>, vector<2x32xf32>
    %c0_5 = arith.constant 0 : index
    %c0_6 = arith.constant 0 : index
    %3 = vector.load %arg3[%c0_5, %c0_6] : memref<64x1xf32, #tpu.memory_space<vmem>>, vector<64x1xf32>
    %c0_7 = arith.constant 0 : index
    %c0_8 = arith.constant 0 : index
    %4 = vector.load %arg5[%c0_7, %c0_8] : memref<32x1xf32, #tpu.memory_space<vmem>>, vector<32x1xf32>
    %c0_9 = arith.constant 0 : index
    %c0_10 = arith.constant 0 : index
    %5 = vector.load %arg7[%c0_9, %c0_10] : memref<2x1xf32, #tpu.memory_space<vmem>>, vector<2x1xf32>
    %c0_i32 = arith.constant 0 : i32
    %c128_i32 = arith.constant 128 : i32
    %6 = arith.muli %c0_i32, %c128_i32 : i32
    %7 = tpu.assume_multiple %6, 128 : i32
    %c0_11 = arith.constant 0 : index
    %8 = arith.index_cast %7 : i32 to index
    %9 = vector.load %arg1[%c0_11, %8] : memref<6x128xf32, #tpu.memory_space<vmem>>, vector<6x128xf32>
    %cst = arith.constant dense<0.000000e+00> : vector<64x128xf32>
    %10 = tpu.matmul %0, %9, %cst {dimension_numbers = #tpu.dot_dimension_numbers<[1], [0], [0], [1], [0, 0, 1, 1], [], []>} : vector<64x6xf32>, vector<6x128xf32>, vector<64x128xf32> -> vector<64x128xf32>
    %11 = vector.broadcast %3 : vector<64x1xf32> to vector<64x128xf32>
    %12 = arith.addf %10, %11 : vector<64x128xf32>
    %cst_12 = arith.constant 0.000000e+00 : f32
    %13 = vector.broadcast %cst_12 : f32 to vector<64x128xf32>
    %14 = arith.maximumf %12, %13 : vector<64x128xf32>
    %cst_13 = arith.constant dense<0.000000e+00> : vector<32x128xf32>
    %15 = tpu.matmul %1, %14, %cst_13 {dimension_numbers = #tpu.dot_dimension_numbers<[1], [0], [0], [1], [0, 0, 1, 1], [], []>} : vector<32x64xf32>, vector<64x128xf32>, vector<32x128xf32> -> vector<32x128xf32>
    %16 = vector.broadcast %4 : vector<32x1xf32> to vector<32x128xf32>
    %17 = arith.addf %15, %16 : vector<32x128xf32>
    %cst_14 = arith.constant 0.000000e+00 : f32
    %18 = vector.broadcast %cst_14 : f32 to vector<32x128xf32>
    %19 = arith.maximumf %17, %18 : vector<32x128xf32>
    %cst_15 = arith.constant dense<0.000000e+00> : vector<2x128xf32>
    %20 = tpu.matmul %2, %19, %cst_15 {dimension_numbers = #tpu.dot_dimension_numbers<[1], [0], [0], [1], [0, 0, 1, 1], [], []>} : vector<2x32xf32>, vector<32x128xf32>, vector<2x128xf32> -> vector<2x128xf32>
    %21 = vector.broadcast %5 : vector<2x1xf32> to vector<2x128xf32>
    %22 = arith.addf %20, %21 : vector<2x128xf32>
    %c0_16 = arith.constant 0 : index
    %23 = arith.index_cast %7 : i32 to index
    %24 = vector.load %arg8[%c0_16, %23] : memref<2x128xf32, #tpu.memory_space<vmem>>, vector<2x128xf32>
    tpu.vector_store %arg8[%c0_16, %23], %22 {strides = array<i32>} : memref<2x128xf32, #tpu.memory_space<vmem>>, vector<2x128xf32>,
    %c1_i32 = arith.constant 1 : i32
    return
  }
  func.func @transform_0(%arg0: i32) -> (i32, i32) {
    %c0_i32 = arith.constant 0 : i32
    %c0_i32_0 = arith.constant 0 : i32
    return %c0_i32, %arg0 : i32, i32
  }
  func.func @transform_1(%arg0: i32) -> (i32, i32) {
    %c0_i32 = arith.constant 0 : i32
    %c0_i32_0 = arith.constant 0 : i32
    %c0_i32_1 = arith.constant 0 : i32
    return %c0_i32, %c0_i32_0 : i32, i32
  }
  func.func @transform_2(%arg0: i32) -> (i32, i32) {
    %c0_i32 = arith.constant 0 : i32
    %c0_i32_0 = arith.constant 0 : i32
    %c0_i32_1 = arith.constant 0 : i32
    return %c0_i32, %c0_i32_0 : i32, i32
  }
  func.func @transform_3(%arg0: i32) -> (i32, i32) {
    %c0_i32 = arith.constant 0 : i32
    %c0_i32_0 = arith.constant 0 : i32
    %c0_i32_1 = arith.constant 0 : i32
    return %c0_i32, %c0_i32_0 : i32, i32
  }
  func.func @transform_4(%arg0: i32) -> (i32, i32) {
    %c0_i32 = arith.constant 0 : i32
    %c0_i32_0 = arith.constant 0 : i32
    %c0_i32_1 = arith.constant 0 : i32
    return %c0_i32, %c0_i32_0 : i32, i32
  }
  func.func @transform_5(%arg0: i32) -> (i32, i32) {
    %c0_i32 = arith.constant 0 : i32
    %c0_i32_0 = arith.constant 0 : i32
    %c0_i32_1 = arith.constant 0 : i32
    return %c0_i32, %c0_i32_0 : i32, i32
  }
  func.func @transform_6(%arg0: i32) -> (i32, i32) {
    %c0_i32 = arith.constant 0 : i32
    %c0_i32_0 = arith.constant 0 : i32
    %c0_i32_1 = arith.constant 0 : i32
    return %c0_i32, %c0_i32_0 : i32, i32
  }
  func.func @transform_7(%arg0: i32) -> (i32, i32) {
    %c0_i32 = arith.constant 0 : i32
    %c0_i32_0 = arith.constant 0 : i32
    return %c0_i32, %arg0 : i32, i32
  }
}

</mosaic_0001>

<bundles_post_ra>
// kernel: tpu_custom_call.1
= control target key start
LH: loop header
LB: loop body
LE: loop exit
PB: predicated region body
PF: predicated region fallthrough
CT: control target
= control target key end

     0   :  { %vm119_vm0 = vcmask 1045504   ;;  %vm94_vm1 = vcmask 48128   ;;  %v338_v2 = vmov 0   ;;  %s472_s0 = inlined_call_operand.vmem [shape: f32[6,128], index: 0, kind: input, shape index: {}]   ;;  %s473_s1 = inlined_call_operand.vmem [shape: f32[64,6], index: 1, kind: input, shape index: {}]   ;;  %s474_s2 = inlined_call_operand.vmem [shape: f32[64,1], index: 2, kind: input, shape index: {}]   ;;  %s475_s3 = inlined_call_operand.vmem [shape: f32[32,64], index: 3, kind: input, shape index: {}]   ;;  %s476_s4 = inlined_call_operand.vmem [shape: f32[32,1], index: 4, kind: input, shape index: {}]   ;;  %s477_s5 = inlined_call_operand.vmem [shape: f32[2,32], index: 5, kind: input, shape index: {}]   ;;  %s478_s6 = inlined_call_operand.vmem [shape: f32[2,1], index: 6, kind: input, shape index: {}]   ;;  %s479_s7 = inlined_call_operand.hbm [shape: f32[2,128], index: 7, kind: output, shape index: {}]  }
   0x1   :  { %v53_v0 = vld [vmem:[%s472_s0] sm:$0x3f]  ;;  %309 = vset.pattern.permute.xlu0 %v338_v2  ;;  %v47_v3 = vld [vmem:[%s474_s2 + $0x38] sm:$0xff]  ;;  %v45_v5 = vld [vmem:[%s474_s2 + $0x28] sm:$0xff]  ;;  %310 = vset.pattern.permute.xlu1 %v338_v2 }
   0x2   :  { %v31_v1 = vld [vmem:[%s473_s1 + $0x20] sm:$0xff]  ;;  %298 = vmatpush.msk.msra.mxu3 %vm119_vm0, %v53_v0  ;;  %91 = vperm.xlu0 %309, %v47_v3   ;;  %v43_v6 = vld [vmem:[%s474_s2 + $0x18] sm:$0xff]  ;;  %v32_v7 = vld [vmem:[%s473_s1 + $0x28] sm:$0xff] }
   0x3   :  { %v27_v4 = vld [vmem:[%s473_s1] sm:$0xff]  ;;  %289 = vmatmul.msk.f32.vlgmr.msra.gmra.mxu3 %vm94_vm1, %v31_v1  ;;  %284 = vmatpush.msk.msra.mxu0 %vm119_vm0, %v53_v0  ;;  %v46_v8 = vld [vmem:[%s474_s2 + $0x30] sm:$0xff] }
   0x4   :  { %285 = vmatmul.msk.f32.vlgmr.msra.gmra.mxu0 %vm94_vm1, %v27_v4  ;;  %81 = vperm.xlu1 %310, %v45_v5  }
   0x5   :  { %311 = vset.pattern.permute.xlu2 %v338_v2 }
   0x6   :  { %71 = vperm.xlu2 %311, %v43_v6  }
   0x7   :  { %12 = vsyncpa [#allocation3], 0  ;;  %v28_v9 = vld [vmem:[%s473_s1 + $0x8] sm:$0xff]  ;;  %v44_v10 = vld [vmem:[%s474_s2 + $0x20] sm:$0xff]  ;;  %vm192_vm2 = vcmask 523264   ;;  %vm243_vm3 = vcmask 261120  }
   0x8   :  { %v42_v11 = vld [vmem:[%s474_s2 + $0x10] sm:$0xff]  ;;  %v41_v13 = vld [vmem:[%s474_s2 + $0x8] sm:$0xff]  ;;  %v40_v15 = vld [vmem:[%s474_s2] sm:$0xff]  ;;  %s339_s25 = smov [#allocation2]   ;;  %s275_s29 = sshll.u32 %s479_s7, 4  ;;  %s276_s29 = int_to_ptr.hbm [resolvable:$true] %s275_s29 }
   0x9   :  { %v33_v12 = vld [vmem:[%s473_s1 + $0x30] sm:$0xff]  ;;  %v51_v16 = vld [vmem:[%s476_s4 + $0x18] sm:$0xff]  ;;  %v49_v20 = vld [vmem:[%s476_s4 + $0x8] sm:$0xff]  ;;  %s273_s26 = sshll.u32 %s339_s25, 4  ;;  %s274_s26 = int_to_ptr.vmem [resolvable:$true] %s273_s26 }
   0xa   :  { %86 = vperm.xlu0 %309, %v46_v8   ;;  %v29_v14 = vld [vmem:[%s473_s1 + $0x10] sm:$0xff]  ;;  %v34_v17 = vld [vmem:[%s473_s1 + $0x38] sm:$0xff]  ;;  %v48_v21 = vld [vmem:[%s476_s4] sm:$0xff] }
   0xb   :  { %290 = vmatmul.msk.f32.gmra.mxu3 %vm94_vm1, %v32_v7  ;;  %v50_v18 = vld [vmem:[%s476_s4 + $0x10] sm:$0xff]  ;;  %v30_v19 = vld [vmem:[%s473_s1 + $0x18] sm:$0xff]  ;;  %v52_v22 = vld [vmem:[%s478_s6] sm:$0x3] }
   0xc   :  { %286 = vmatmul.msk.f32.gmra.mxu0 %vm94_vm1, %v28_v9  ;;  %76 = vperm.xlu1 %310, %v44_v10   ;;  %v35_v55 = vld [vmem:[%s475_s3] sm:$0xff]  ;;  %v38_v56 = vld [vmem:[%s475_s3 + $0x18] sm:$0xff]  ;;  %v36_v57 = vld [vmem:[%s475_s3 + $0x8] sm:$0xff] }
   0xd   :  { %v37_v58 = vld [vmem:[%s475_s3 + $0x10] sm:$0xff] }
   0xe   :  { %66 = vperm.xlu2 %311, %v42_v11   ;;  %v39_v11 = vld [vmem:[%s477_s5] sm:$0x3] }
  0x12   :  { %61 = vperm.xlu0 %309, %v41_v13  }
  0x13   :  { %291 = vmatmul.msk.f32.gmra.mxu3 %vm94_vm1, %v33_v12 }
  0x14   :  { %287 = vmatmul.msk.f32.gmra.mxu0 %vm94_vm1, %v29_v14  ;;  %56 = vperm.xlu1 %310, %v40_v15  }
  0x16   :  { %189 = vperm.xlu2 %311, %v51_v16  }
  0x1a   :  { %184 = vperm.xlu0 %309, %v50_v18  }
  0x1b   :  { %292 = vmatmul.msk.f32.gmra.mxu3 %vm94_vm1, %v34_v17 }
  0x1c   :  { %288 = vmatmul.msk.f32.gmra.mxu0 %vm94_vm1, %v30_v19  ;;  %179 = vperm.xlu1 %310, %v49_v20  }
  0x1e   :  { %174 = vperm.xlu2 %311, %v48_v21  }
  0x22   :  { %240 = vperm.xlu0 %309, %v52_v22  }
  0x60   :  { %v72_v31 = vpop.permute.xlu2 %71 }
  0x68   :  { %v67_v44 = vpop.permute.xlu2 %66 }
  0x70   :  { %v190_v60 = vpop.permute.xlu2 %189 }
  0x74   :  { %v92_v27 = vpop.permute.xlu0 %91 }
  0x76   :  { %v82_v28 = vpop.permute.xlu1 %81 }
  0x78   :  { %v175_v6 = vpop.permute.xlu2 %174 }
  0x7c   :  { %v87_v32 = vpop.permute.xlu0 %86 }
  0x7e   :  { %v77_v33 = vpop.permute.xlu1 %76 }
  0x81   :  { %v140_v23 = vpop.f32.mrf.mxu0 }
  0x84   :  { %v62_v47 = vpop.permute.xlu0 %61 }
  0x86   :  { %v152_v24 = vpop.f32.mrf.mxu3  ;;  %v57_v48 = vpop.permute.xlu1 %56 }
  0x87   :  { %v153_v40 = vadd.f32 %v152_v24, %v77_v33  ;;  %v141_v51 = vadd.f32 %v140_v23, %v57_v48 }
  0x89   :  { %v143_v26 = vpop.f32.mrf.mxu0  ;;  %v168_v45 = vmax.f32 %v153_v40, 0.0  ;;  %v164_v54 = vmax.f32 %v141_v51, 0.0 }
  0x8a   :  { %v144_v49 = vadd.f32 %v143_v26, %v62_v47 }
  0x8c   :  { %v165_v53 = vmax.f32 %v144_v49, 0.0  ;;  %v185_v1 = vpop.permute.xlu0 %184 }
  0x8e   :  { %v155_v25 = vpop.f32.mrf.mxu3  ;;  %v180_v2 = vpop.permute.xlu1 %179 }
  0x8f   :  { %v156_v37 = vadd.f32 %v155_v25, %v82_v28 }
  0x91   :  { %v146_v30 = vpop.f32.mrf.mxu0  ;;  %v169_v42 = vmax.f32 %v156_v37, 0.0 }
  0x92   :  { %v147_v46 = vadd.f32 %v146_v30, %v67_v44 }
  0x94   :  { %v166_v52 = vmax.f32 %v147_v46, 0.0  ;;  %v241_v12 = vpop.permute.xlu0 %240 }
  0x96   :  { %v158_v29 = vpop.f32.mrf.mxu3 }
  0x97   :  { %v159_v35 = vadd.f32 %v158_v29, %v87_v32 }
  0x99   :  { %v149_v39 = vpop.f32.mrf.mxu0  ;;  %v170_v41 = vmax.f32 %v159_v35, 0.0 }
  0x9a   :  { %v150_v43 = vadd.f32 %v149_v39, %v72_v31 }
  0x9c   :  { %v167_v50 = vmax.f32 %v150_v43, 0.0 }
  0x9e   :  { %v161_v34 = vpop.f32.mrf.mxu3 }
  0x9f   :  { %v162_v36 = vadd.f32 %v161_v34, %v92_v27 }
  0xa1   :  { %v171_v38 = vmax.f32 %v162_v36, 0.0 }
  0xa3   :  { %213 = vmatpush.msra.mxu1 %v171_v38  ;;  %299 = vmatpush.msra.mxu2 %v171_v38 }
  0xa5   :  { %214 = vmatpush.msra.mxu1 %v170_v41  ;;  %300 = vmatpush.msra.mxu2 %v170_v41 }
  0xa7   :  { %215 = vmatpush.msra.mxu1 %v169_v42  ;;  %301 = vmatpush.msra.mxu2 %v169_v42 }
  0xa9   :  { %216 = vmatpush.msra.mxu1 %v168_v45  ;;  %302 = vmatpush.msra.mxu2 %v168_v45 }
  0xab   :  { %217 = vmatpush.msra.mxu1 %v167_v50  ;;  %303 = vmatpush.msra.mxu2 %v167_v50 }
  0xad   :  { %218 = vmatpush.msra.mxu1 %v166_v52  ;;  %304 = vmatpush.msra.mxu2 %v166_v52 }
  0xaf   :  { %219 = vmatpush.msra.mxu1 %v165_v53  ;;  %305 = vmatpush.msra.mxu2 %v165_v53 }
  0xb1   :  { %220 = vmatpush.msra.mxu1 %v164_v54  ;;  %306 = vmatpush.msra.mxu2 %v164_v54 }
  0xb2   :  { %293 = vmatmul.msk.f32.vlgmr.msra.gmra.mxu1 %vm192_vm2, %v35_v55  ;;  %296 = vmatmul.msk.f32.vlgmr.msra.gmra.mxu2 %vm192_vm2, %v38_v56 }
  0xba   :  { %294 = vmatmul.msk.f32.gmra.mxu1 %vm192_vm2, %v36_v57 }
  0xc2   :  { %295 = vmatmul.msk.f32.gmra.mxu1 %vm192_vm2, %v37_v58 }
 0x12f   :  { %v222_v59 = vpop.f32.mrf.mxu1 }
 0x130   :  { %v223_v7 = vadd.f32 %v222_v59, %v175_v6 }
 0x132   :  { %v234_v10 = vmax.f32 %v223_v7, 0.0 }
 0x135   :  { %v231_v61 = vpop.f32.mrf.mxu2 }
 0x136   :  { %v232_v62 = vadd.f32 %v231_v61, %v190_v60 }
 0x137   :  { %v225_v63 = vpop.f32.mrf.mxu1 }
 0x138   :  { %v237_v0 = vmax.f32 %v232_v62, 0.0  ;;  %v226_v4 = vadd.f32 %v225_v63, %v180_v2 }
 0x13a   :  { %259 = vmatpush.msrb.mxu2 %v237_v0  ;;  %v235_v9 = vmax.f32 %v226_v4, 0.0 }
 0x13f   :  { %v228_v3 = vpop.f32.mrf.mxu1 }
 0x140   :  { %v229_v5 = vadd.f32 %v228_v3, %v185_v1 }
 0x142   :  { %v236_v8 = vmax.f32 %v229_v5, 0.0 }
 0x144   :  { %260 = vmatpush.msrb.mxu2 %v236_v8 }
 0x146   :  { %261 = vmatpush.msrb.mxu2 %v235_v9 }
 0x148   :  { %262 = vmatpush.msrb.mxu2 %v234_v10 }
 0x149   :  { %297 = vmatmul.msk.f32.vlgmr.msrb.gmra.mxu2 %vm243_vm3, %v39_v11 }
 0x1cc   :  { %v264_v13 = vpop.f32.mrf.mxu2 }
 0x1cd   :  { %v265_v14 = vadd.f32 %v264_v13, %v241_v12 }
 0x1cf   :  { %267 = vst [vmem:[#allocation2] sm:$0x3] %v265_v14 }
 0x1d0   :  { %278 = dma.vmem_to_hbm [thread:$0]  %s274_s26, 32, %s276_s29, [#allocation3]  }
 0x1d1   :  { %336 = dma.done.wait [#allocation3], 32  }
 0x1d2   :  { %337 = vsyncadd [#allocation3], 4294967264 }
 0x1d3   :  { %283 = vsyncpa [#allocation3], 1 }

</bundles_post_ra>
